<compile_context>
chip_gen: v5e
topology: v5e:2x2
jax: 0.10.0
libtpu: 0.0.40
codegen_flags: <defaults>
</compile_context>

<pallas_src>
import functools

import numpy as np
import jax
import jax.numpy as jnp
from jax import lax
from jax.experimental import pallas as pl
from jax.experimental.pallas import tpu as pltpu


# --------------------------------------------------------------------------
# Budgets (per-generation)
# --------------------------------------------------------------------------
def _vmem_capacity_bytes():
    try:
        return int(pltpu.get_tpu_info().vmem_capacity_bytes)
    except Exception:
        return 64 * 1024 * 1024          # conservative (v7x per-TensorCore)


_VMEM_CAP = _vmem_capacity_bytes()
# Scoped limit declared to the compiler: half physical, capped at 64 MiB.
_VMEM_LIMIT = min(max(32 * 1024 * 1024, _VMEM_CAP // 2), 64 * 1024 * 1024)
# What our blocks + in-kernel temporaries may use (leave 25% compiler slack).
_WORKSET_BYTES = (_VMEM_LIMIT * 3) // 4
# Target size of one (single) input block: 1-4 MiB saturates the HBM pipeline.
_TARGET_IN_BYTES = 2 * 1024 * 1024

_I32_MIN = int(np.iinfo(np.int32).min)
_I32_MAX = int(np.iinfo(np.int32).max)


def _cdiv(a, b):
    return -(-a // b)


def _floor_to(a, m):
    return (a // m) * m


def _ceil_to(a, m):
    return -(-a // m) * m


def _sublane_multiple(itemsize):
    # packed-sublane multiple: 8 for 4-byte, 16 for 2-byte, 32 for 1-byte
    return max(8, 32 // max(1, itemsize))


def _compiler_params(n_grid_axes):
    # All grid axes index disjoint output blocks -> "parallel" (lets Mosaic
    # shard the grid across both TensorCores on v7x; harmless on v5e/v6e).
    return pltpu.CompilerParams(
        dimension_semantics=("parallel",) * n_grid_axes,
        vmem_limit_bytes=_VMEM_LIMIT,
    )


# --------------------------------------------------------------------------
# In-kernel helpers
# --------------------------------------------------------------------------
def _order_key(x):
    """Monotone int32 ordering key: a < b  <=>  key(a) < key(b).

    NaN maps to INT32_MIN so any NaN wins every min, and the smallest-index
    tie-break then returns the FIRST NaN (torch.argmin semantics).
    -0.0 and +0.0 both map to 0 (they compare equal).  Signed integers are
    order-preserved by a plain int32 cast.  This replaces the previous 3-pass
    (value min / index min / nan-index min) float path with 2 passes.
    """
    if jnp.issubdtype(x.dtype, jnp.floating):
        xf = x.astype(jnp.float32)                    # exact & monotone for bf16/f16
        bits = pltpu.bitcast(xf, jnp.int32)
        key = jnp.where(bits < 0, jnp.int32(_I32_MIN) - bits, bits)
        return jnp.where(xf != xf, jnp.int32(_I32_MIN), key)
    return x.astype(jnp.int32)


# --------------------------------------------------------------------------
# Kernels
# --------------------------------------------------------------------------
def _argmin_rows_kernel(x_ref, idx_ref):
    """Argmin over the last (lane) axis of a (TM, K) tile -> (TM, 1) int32."""
    x = x_ref[...]
    key = _order_key(x)
    K = x.shape[-1]
    lane = lax.broadcasted_iota(jnp.int32, key.shape, 1)
    kmin = jnp.min(key, axis=-1, keepdims=True)
    idx = jnp.min(jnp.where(key == kmin, lane, jnp.int32(K)), axis=-1, keepdims=True)
    # TODO(synk): a lane-dense (TM//128, 128) idx slab would need an in-kernel
    # sublane->lane relayout (XLU reshape); kept as a (TM, 1) column for
    # lowering safety.  The 128-lane padding IS counted in the VMEM budget.
    idx_ref[...] = idx


def _argmin_sublanes_kernel(x_ref, idx_ref):
    """Argmin over the sublane axis (axis=1) of a (GP, R, TP) tile."""
    x = x_ref[...]
    key = _order_key(x)
    R = x.shape[1]
    row = lax.broadcasted_iota(jnp.int32, key.shape, 1)
    kmin = jnp.min(key, axis=1, keepdims=True)            # (GP, 1, TP)
    idx = jnp.min(jnp.where(key == kmin, row, jnp.int32(R)), axis=1, keepdims=True)
    idx_ref[...] = idx


def _argmin_rowblock_kernel(x_ref, idx_ref, key_ref, *, rows_total, block_rows,
                            need_mask):
    """Global-path partial reduce: min over the rows of a (SB, TW) tile.

    Emits the per-lane min KEY and the per-lane in-block row index as
    lane-dense (1, 1, TW) blocks.  Partial last row-block is masked via
    program_id against the static total row count (only compiled in when
    rows_total % block_rows != 0).
    """
    x = x_ref[...]                                         # (SB, TW)
    key = _order_key(x)
    row = lax.broadcasted_iota(jnp.int32, key.shape, 0)
    if need_mask:
        valid = (pl.program_id(0) * block_rows + row) < rows_total
        key = jnp.where(valid, key, jnp.int32(_I32_MAX))
    kmin = jnp.min(key, axis=0, keepdims=True)             # (1, TW)
    idx = jnp.min(jnp.where(key == kmin, row, jnp.int32(block_rows)),
                  axis=0, keepdims=True)
    idx_ref[...] = idx[None]
    key_ref[...] = kmin[None]


# --------------------------------------------------------------------------
# Tile sizing (counts double-buffered input, padded outputs and temporaries)
# --------------------------------------------------------------------------
def _row_tile(M, K, itemsize, is_float):
    sub = _sublane_multiple(itemsize)
    temps = 16 if is_float else 8          # ~4 (2) full-tile int32 temporaries
    per_row = K * (2 * itemsize + temps) + 2 * 128 * 4     # + padded (TM,1) out
    tm_ws = max(1, _WORKSET_BYTES // per_row)
    tm_in = max(1, _TARGET_IN_BYTES // max(1, K * itemsize))
    TM = max(sub, _floor_to(min(M, tm_ws, tm_in), sub))
    TM = min(TM, _ceil_to(M, sub))
    # v7x: give the grid >= 2 parallel steps when the row count allows it.
    if _cdiv(M, TM) < 2 and M >= 2 * sub:
        TM = max(sub, _floor_to(_cdiv(M, 2), sub))
    # TODO(synk): if K alone overflows the working set even at TM=sub, a K grid
    # axis with running-min scratch is needed; we still emit TM=sub here.
    return TM


def _other_axis_tiles(pre, R, post, itemsize, is_float):
    temps = 16 if is_float else 8
    per_elem = 2 * itemsize + temps
    # lane tile over `post`
    tp_in = _TARGET_IN_BYTES // max(1, R * itemsize)
    tp_ws = _WORKSET_BYTES // max(1, R * per_elem + 8 * 4 * 2)
    tp_cap = max(128, _floor_to(min(tp_in, tp_ws, 8192), 128))
    TP = post if post <= tp_cap else _floor_to(tp_cap, 128)
    # TODO(synk): TP < 128 (tiny `post`) under-uses lanes; a free fold of `pre`
    # into lanes is impossible without an in-kernel relayout and a wrapper
    # transpose would add two full HBM passes, so the direct tile is kept.
    # leading tile over `pre`
    per_gp = R * TP * per_elem + TP * 8 * 4 * 2            # + padded (·,1,TP) out
    gp_ws = max(1, _WORKSET_BYTES // max(1, per_gp))
    gp_in = max(1, _TARGET_IN_BYTES // max(1, R * TP * itemsize))
    GP = max(1, min(pre, gp_ws, gp_in))
    # v7x: at least 2 grid steps whenever the shape allows it.
    if _cdiv(pre, GP) * _cdiv(post, TP) < 2:
        if pre >= 2:
            GP = max(1, pre // 2)
        elif post >= 256 and TP >= 256:
            TP = max(128, _floor_to(_cdiv(post, 2), 128))
    # TODO(synk): if R alone is huge (R * 128 * per_elem > working set) an R
    # grid axis with running-min scratch is needed.
    return GP, TP


def _rowblock_tiles(rows, width, itemsize, is_float):
    sub = _sublane_multiple(itemsize)
    temps = 16 if is_float else 8
    per_elem = 2 * itemsize + temps
    tw_cap = max(128, _floor_to(min(8192, _TARGET_IN_BYTES // max(1, sub * itemsize)), 128))
    TW = width if width <= tw_cap else _floor_to(tw_cap, 128)
    out_fixed = 2 * 2 * 8 * TW * 4          # 2 outputs, 8-sublane pad, dbl-buffered
    sb_ws = max(1, (_WORKSET_BYTES - out_fixed) // max(1, TW * per_elem))
    sb_in = max(1, _TARGET_IN_BYTES // max(1, TW * itemsize))
    SB = max(sub, _floor_to(min(rows, sb_ws, sb_in), sub))
    SB = min(SB, _ceil_to(rows, sub))
    if _cdiv(rows, SB) * _cdiv(width, TW) < 2 and rows >= 2 * sub:
        SB = max(sub, _floor_to(_cdiv(rows, 2), sub))
    return SB, TW


# --------------------------------------------------------------------------
# Wrappers
# --------------------------------------------------------------------------
def _argmin_last_axis(x2d):
    """Row-wise argmin over the last axis of a 2-D (M, K) array -> (M,) int32."""
    M, K = (int(s) for s in x2d.shape)
    itemsize = np.dtype(x2d.dtype).itemsize
    is_f = jnp.issubdtype(x2d.dtype, jnp.floating)
    TM = _row_tile(M, K, itemsize, is_f)
    out = pl.pallas_call(
        _argmin_rows_kernel,
        out_shape=jax.ShapeDtypeStruct((M, 1), jnp.int32),
        grid=(_cdiv(M, TM),),
        in_specs=[pl.BlockSpec((TM, K), lambda i: (i, 0))],
        out_specs=pl.BlockSpec((TM, 1), lambda i: (i, 0)),
        compiler_params=_compiler_params(1),
    )(x2d)
    return out.reshape(M)


def _argmin_other_axis(x, d):
    """Argmin over axis d (d != last axis).  Returns (pre, 1, post) int32."""
    shape = tuple(int(s) for s in x.shape)
    R = shape[d]
    pre = int(np.prod(shape[:d])) if d > 0 else 1
    post = int(np.prod(shape[d + 1:])) if d < len(shape) - 1 else 1
    x3 = x.reshape(pre, R, post)                 # free: contiguous regrouping
    itemsize = np.dtype(x.dtype).itemsize
    is_f = jnp.issubdtype(x.dtype, jnp.floating)
    GP, TP = _other_axis_tiles(pre, R, post, itemsize, is_f)
    return pl.pallas_call(
        _argmin_sublanes_kernel,
        out_shape=jax.ShapeDtypeStruct((pre, 1, post), jnp.int32),
        grid=(_cdiv(pre, GP), _cdiv(post, TP)),
        in_specs=[pl.BlockSpec((GP, R, TP), lambda i, j: (i, 0, j))],
        out_specs=pl.BlockSpec((GP, 1, TP), lambda i, j: (i, 0, j)),
        compiler_params=_compiler_params(2),
    )(x3)


def _jnp_argmin_flat(flat):
    """Tiny-tensor fallback global argmin with torch NaN semantics (pure jnp)."""
    L = int(flat.shape[0])
    ids = jnp.arange(L, dtype=jnp.int32)
    sent = jnp.int32(L)
    if jnp.issubdtype(flat.dtype, jnp.floating):
        isn = jnp.isnan(flat)
        v = jnp.where(isn, jnp.inf, flat)
        vmin = jnp.min(v)
        first_min = jnp.min(jnp.where(v == vmin, ids, sent))
        first_nan = jnp.min(jnp.where(isn, ids, sent))
        return jnp.where(first_nan < sent, first_nan, first_min).astype(jnp.int32)
    vmin = jnp.min(flat)
    return jnp.min(jnp.where(flat == vmin, ids, sent)).astype(jnp.int32)


def _argmin_global(x):
    """Global argmin over the flattened tensor -> 0-d int32.

    Two stages: a Pallas row-block reduce over a lane-dense 2-D view emitting
    per-(block, lane) (min-key, row) partials, then a tiny jnp merge.
    """
    shape = tuple(int(s) for s in x.shape)
    L = int(np.prod(shape)) if shape else 1
    flat = x.reshape(-1)
    is_f = jnp.issubdtype(flat.dtype, jnp.floating)

    if L < 1024:
        return _jnp_argmin_flat(flat)

    if L % 128 == 0:
        W = 128
        x2d = flat.reshape(L // 128, 128)                 # free view, lane-dense
    elif x.ndim >= 2 and shape[-1] >= 128:
        W = shape[-1]
        x2d = x.reshape(-1, W)                            # free view
    else:
        # TODO(synk): a zero-copy ragged tail needs in-kernel masking over an
        # ANY-space 1-D input; this sub-128-element pad still costs one HBM copy.
        pad = (-L) % 128
        fill = float("inf") if is_f else int(np.iinfo(flat.dtype).max)
        flat = jnp.pad(flat, (0, pad), constant_values=fill)
        W = 128
        x2d = flat.reshape(-1, 128)

    rows = int(x2d.shape[0])
    itemsize = np.dtype(x2d.dtype).itemsize
    SB, TW = _rowblock_tiles(rows, W, itemsize, is_f)
    NB = _cdiv(rows, SB)
    need_mask = (rows % SB) != 0
    kern = functools.partial(_argmin_rowblock_kernel, rows_total=rows,
                             block_rows=SB, need_mask=need_mask)
    idx, keys = pl.pallas_call(
        kern,
        out_shape=(jax.ShapeDtypeStruct((NB, 1, W), jnp.int32),
                   jax.ShapeDtypeStruct((NB, 1, W), jnp.int32)),
        grid=(NB, _cdiv(W, TW)),
        in_specs=[pl.BlockSpec((SB, TW), lambda i, j: (i, j))],
        out_specs=(pl.BlockSpec((1, 1, TW), lambda i, j: (i, 0, j)),
                   pl.BlockSpec((1, 1, TW), lambda i, j: (i, 0, j))),
        compiler_params=_compiler_params(2),
    )(x2d)

    # Tiny jnp second stage over the (NB, W) partials.
    keys2 = keys.reshape(NB, W)
    sidx2 = idx.reshape(NB, W)
    cols = jnp.arange(W, dtype=jnp.int32)[None, :]
    base = (jnp.arange(NB, dtype=jnp.int32) * jnp.int32(SB))[:, None]
    # TODO(synk): flat-index math is int32; tensors with >= 2**31 elements need
    # jax x64 enabled and int64 index arithmetic here (and an int64 result).
    flat_idx = (base + sidx2) * jnp.int32(W) + cols
    kmin = jnp.min(keys2)
    best = jnp.min(jnp.where(keys2 == kmin, flat_idx, jnp.int32(_I32_MAX)))
    return best.astype(jnp.int32)


def arg_min_module(x, dim=None, keep_dims=True):
    """Forward pass of ArgMinModule.

    Mirrors the PyTorch module exactly, INCLUDING the `if self.dim:` truthiness
    quirk: dim=None OR dim=0 both take the global-argmin branch (this diverges
    from torch.argmin(x, dim=0) on purpose — it matches the module).
    Indices are int32 (torch returns int64; values are identical).
    """
    if dim:
        d = dim % x.ndim
        if d == x.ndim - 1:
            lead = x.shape[:-1]
            K = int(x.shape[-1])
            M = int(np.prod(lead)) if lead else 1
            idx = _argmin_last_axis(x.reshape(M, K))
            out = idx.reshape(lead)
            if keep_dims:
                out = jnp.expand_dims(out, d)
            return out
        out3 = _argmin_other_axis(x, d)                   # (pre, 1, post)
        if keep_dims:
            new_shape = x.shape[:d] + (1,) + x.shape[d + 1:]
        else:
            new_shape = x.shape[:d] + x.shape[d + 1:]
        return out3.reshape(new_shape)
    # torch.argmin(tensor): global argmin over the flattened tensor -> 0-d
    return _argmin_global(x)


# --------------------------------------------------------------------------
# Self-test
# --------------------------------------------------------------------------
if __name__ == "__main__":
    key = jax.random.PRNGKey(0)
    x = jax.random.normal(key, (2, 4, 16, 16), dtype=jnp.float32)

    # Case 1: dim=None -> global argmin (0-d result, Pallas row-block path)
    out_global = jax.block_until_ready(arg_min_module(x, dim=None))
    assert out_global.shape == ()
    assert int(out_global) == int(jnp.argmin(x)), (int(out_global), int(jnp.argmin(x)))

    # Case 2: dim=3, keepDims=True (lane-axis reduce)
    out_d3 = jax.block_until_ready(arg_min_module(x, dim=3, keep_dims=True))
    ref_d3 = jnp.argmin(x, axis=3, keepdims=True).astype(jnp.int32)
    assert out_d3.shape == (2, 4, 16, 1)
    assert bool(jnp.all(out_d3 == ref_d3))

    # Case 3: dim=1, keepDims=False (sublane reduce, no transpose, post >= 128)
    out_d1 = jax.block_until_ready(arg_min_module(x, dim=1, keep_dims=False))
    ref_d1 = jnp.argmin(x, axis=1).astype(jnp.int32)
    assert out_d1.shape == (2, 16, 16)
    assert bool(jnp.all(out_d1 == ref_d1))

    # Case 4: dim=2, keepDims=False (sublane reduce with post < 128)
    out_d2 = jax.block_until_ready(arg_min_module(x, dim=2, keep_dims=False))
    ref_d2 = jnp.argmin(x, axis=2).astype(jnp.int32)
    assert out_d2.shape == (2, 4, 16)
    assert bool(jnp.all(out_d2 == ref_d2))

    # Case 5: NaN semantics match torch.argmin (index of the first NaN)
    x_nan = x.at[1, 2, 3, 4].set(jnp.nan)
    out_nan_d3 = jax.block_until_ready(arg_min_module(x_nan, dim=3, keep_dims=False))
    assert int(out_nan_d3[1, 2, 3]) == 4
    out_nan_d1 = jax.block_until_ready(arg_min_module(x_nan, dim=1, keep_dims=False))
    assert int(out_nan_d1[1, 3, 4]) == 2
    out_nan_glob = jax.block_until_ready(arg_min_module(x_nan, dim=None))
    assert int(out_nan_glob) == int(np.ravel_multi_index((1, 2, 3, 4), x.shape))

    print("KERNEL_OK")
</pallas_src>

<mosaic_0001>
module attributes {stable_mosaic.version = 11 : i64} {
  func.func @_argmin_rowblock_kernel(%arg0: i32, %arg1: i32, %arg2: memref<8x128xf32, #tpu.memory_space<vmem>>, %arg3: memref<1x1x128xi32, #tpu.memory_space<vmem>>, %arg4: memref<1x1x128xi32, #tpu.memory_space<vmem>>) attributes {dimension_semantics = [#tpu.dimension_semantics<parallel>, #tpu.dimension_semantics<parallel>], iteration_bounds = array<i64: 2, 1>, scalar_prefetch = 0 : i64, scratch_operands = 0 : i64, tpu.core_type = #tpu.core_type<tc>, window_params = [{transform_indices = @transform_0, window_bounds = array<i64: 8, 128>}, {transform_indices = @transform_1, window_bounds = array<i64: 1, 1, 128>}, {transform_indices = @transform_2, window_bounds = array<i64: 1, 1, 128>}]} {
    %c0 = arith.constant 0 : index
    %c0_0 = arith.constant 0 : index
    %0 = vector.load %arg2[%c0, %c0_0] : memref<8x128xf32, #tpu.memory_space<vmem>>, vector<8x128xf32>
    %1 = tpu.bitcast %0 : vector<8x128xf32> -> vector<8x128xi32>
    %c0_i32 = arith.constant 0 : i32
    %2 = vector.broadcast %c0_i32 : i32 to vector<8x128xi32>
    %3 = arith.cmpi slt, %1, %2 : vector<8x128xi32>
    %c-2147483648_i32 = arith.constant -2147483648 : i32
    %4 = vector.broadcast %c-2147483648_i32 : i32 to vector<8x128xi32>
    %5 = arith.subi %4, %1 : vector<8x128xi32>
    %6 = arith.select %3, %5, %1 : vector<8x128xi1>, vector<8x128xi32>
    %7 = arith.cmpf one, %0, %0 : vector<8x128xf32>
    %c-2147483648_i32_1 = arith.constant -2147483648 : i32
    %8 = vector.broadcast %c-2147483648_i32_1 : i32 to vector<8x128xi32>
    %9 = arith.select %7, %8, %6 : vector<8x128xi1>, vector<8x128xi32>
    %10 = tpu.iota {dimensions = array<i32: 0>} : vector<8x128xi32>
    %cst = arith.constant dense<2147483647> : vector<128xi32>
    %11 = vector.multi_reduction <minsi>, %9, %cst [0] : vector<8x128xi32> to vector<128xi32>
    %12 = vector.shape_cast %11 : vector<128xi32> to vector<1x128xi32>
    %13 = vector.broadcast %12 : vector<1x128xi32> to vector<8x128xi32>
    %14 = arith.cmpi eq, %9, %13 : vector<8x128xi32>
    %c8_i32 = arith.constant 8 : i32
    %15 = vector.broadcast %c8_i32 : i32 to vector<8x128xi32>
    %16 = arith.select %14, %10, %15 : vector<8x128xi1>, vector<8x128xi32>
    %cst_2 = arith.constant dense<2147483647> : vector<128xi32>
    %17 = vector.multi_reduction <minsi>, %16, %cst_2 [0] : vector<8x128xi32> to vector<128xi32>
    %18 = vector.shape_cast %17 : vector<128xi32> to vector<1x128xi32>
    %19 = vector.shape_cast %18 : vector<1x128xi32> to vector<1x1x128xi32>
    %c0_3 = arith.constant 0 : index
    %c0_4 = arith.constant 0 : index
    %c0_5 = arith.constant 0 : index
    %20 = vector.load %arg3[%c0_3, %c0_4, %c0_5] : memref<1x1x128xi32, #tpu.memory_space<vmem>>, vector<1x1x128xi32>
    tpu.vector_store %arg3[%c0_3, %c0_4, %c0_5], %19 {strides = array<i32>} : memref<1x1x128xi32, #tpu.memory_space<vmem>>, vector<1x1x128xi32>,
    %21 = vector.shape_cast %12 : vector<1x128xi32> to vector<1x1x128xi32>
    %c0_6 = arith.constant 0 : index
    %c0_7 = arith.constant 0 : index
    %c0_8 = arith.constant 0 : index
    %22 = vector.load %arg4[%c0_6, %c0_7, %c0_8] : memref<1x1x128xi32, #tpu.memory_space<vmem>>, vector<1x1x128xi32>
    tpu.vector_store %arg4[%c0_6, %c0_7, %c0_8], %21 {strides = array<i32>} : memref<1x1x128xi32, #tpu.memory_space<vmem>>, vector<1x1x128xi32>,
    return
  }
  func.func @transform_0(%arg0: i32, %arg1: i32) -> (i32, i32) {
    %c0_i32 = arith.constant 0 : i32
    return %arg0, %arg1 : i32, i32
  }
  func.func @transform_1(%arg0: i32, %arg1: i32) -> (i32, i32, i32) {
    %c0_i32 = arith.constant 0 : i32
    %c0_i32_0 = arith.constant 0 : i32
    return %arg0, %c0_i32, %arg1 : i32, i32, i32
  }
  func.func @transform_2(%arg0: i32, %arg1: i32) -> (i32, i32, i32) {
    %c0_i32 = arith.constant 0 : i32
    %c0_i32_0 = arith.constant 0 : i32
    return %arg0, %c0_i32, %arg1 : i32, i32, i32
  }
}

</mosaic_0001>

<bundles_post_ra>
// kernel: tpu_custom_call.1
= control target key start
LH: loop header
LB: loop body
LE: loop exit
PB: predicated region body
PF: predicated region fallthrough
CT: control target
= control target key end

     0   :  { %8 = vsyncpa [#allocation3], 0  ;;  %s732_s0 = inlined_call_operand.hbm [shape: f32[16,128], index: 0, kind: input, shape index: {}]   ;;  %s733_s1 = inlined_call_operand.hbm [shape: s32[2,1,128], index: 1, kind: output, shape index: {0}]   ;;  %s734_s2 = inlined_call_operand.hbm [shape: s32[2,1,128], index: 2, kind: output, shape index: {1}]  }
   0x1   :  { %10 = vsyncpa [#allocation3 + $0x1], 0 }
   0x2   :  { %11 = vsyncpa [#allocation4], 0 }
   0x3   :  { %13 = vsyncpa [#allocation4 + $0x1], 0 }
   0x4   :  { %14 = vsyncpa [#allocation7], 0 }
   0x5   :  { %16 = vsyncpa [#allocation7 + $0x1], 0  ;;  %s595_s9 = smov 0   ;;  %s597_s10 = smov 0  }
   0x6   :  { %s599_s11 = smov 0   ;;  %s601_s12 = smov 0  }
   0x7   :  { %s603_s13 = smov 0   ;;  %s605_s14 = smov 0  }
   0x8 LB: > { %s357_s15 = sadd.s32 4294967295, %s578_s14   ;;  %s358_s16 = sadd.s32 4294967294, %s578_s14   ;;  %s578_s14 = sphi %s605_s14, %s22_s14   ;;  %s574_s13 = sphi %s603_s13, %s743_s13   ;;  %s570_s12 = sphi %s601_s12, %s742_s12   ;;  %s566_s11 = sphi %s599_s11, %s741_s11   ;;  %s562_s10 = sphi %s597_s10, %s740_s10   ;;  %s558_s9 = sphi %s595_s9, %s739_s9  }
   0x9   : > { %s34_s17 = sadd.s32 1, %s574_s13  ;;  %s43_s18 = sadd.s32 1, %s566_s11 }
   0xa   : > { %p36_p0 = scmp.ge.s32.totalorder %s34_s17, 2  ;;  %p50_p1 = scmp.ne.s32.totalorder %s566_s11, %s562_s10 }
   0xb   : > { %p51_p2 = scmp.eq.s32.totalorder %s578_s14, 0  ;;  %p56_p3 = scmp.ne.s32.totalorder %s562_s10, %s558_s9 }
   0xc   : > { %s745_s17 = smov (%p36_p0, %s34_s17), 0  ;;  %p57_p5 = scmp.eq.s32.totalorder %s357_s15, 0 }
   0xd   : > { %p636_p4 = por %p51_p2, %p50_p1  ;;  %s38_s20 = ssub.s32 %s574_s13, %s745_s17 }
   0xe   : > { %p82_p6 = scmp.eq.s32.totalorder %s357_s15, 1  ;;  %p41_p7 = scmp.eq.s32.totalorder %s38_s20, 0 }
   0xf   : > { %p642_p8 = por %p57_p5, %p56_p3  ;;  %p88_p10 = scmp.eq.s32.totalorder %s358_s16, 1 }
  0x10   : > { %p646_p9 = por %p82_p6, %p50_p1  ;;  %p360_p12 = scmp.ge.s32.totalorder %s578_s14, 2 }
  0x11   : > { %s651_s23 = scalar_select %p41_p7, %s566_s11, %s43_s18  }
  0x12   : > { %p653_p11 = por %p88_p10, %p56_p3  ;;  %p384_p13 = scmp.lt.s32.totalorder %s578_s14, 2 }
  0x13   : > { %s136_s25 = sand.u32 1, %s566_s11   ;;  %s362_s27 = sshll.u32 %s574_s13, 3 }
  0x14   : > { %s361_s26 = sshll.u32 %s136_s25, 3  ;;  %s145_s30 = scalar_lea.hbm %s732_s0, %s362_s27 }
  0x15   : > { %s140_s3 = scalar_lea.vmem [#allocation2], %s361_s26  ;;  %s147_s5 = sshll.u32 %s145_s30, 4  ;;  %s148_s5 = int_to_ptr.hbm [resolvable:$true] %s147_s5 }
  0x16   : > { %s149_s4 = sshll.u32 %s140_s3, 4  ;;  %p374_p0 = pnand %p384_p13, %p636_p4  ;;  %s150_s4 = int_to_ptr.vmem [resolvable:$true] %s149_s4 }
  0x17   : > { %p363_p1 = scmp.ge.s32.totalorder %s578_s14, 1  ;;  %p154_p2 = scmp.lt.s32.totalorder %s578_s14, 3 }
  0x18   : > { %s137_s6 = scalar_lea.sflag [#allocation3], %s136_s25 }
  0x19   : > { %376 = dma.hbm_to_vmem [thread:$0]  (!%p374_p0), %s148_s5, 128, %s150_s4, %s137_s6  }
  0x1a   : > { %p155_p3 = pnand %p363_p1, %p154_p2 }
  0x1b   : > { %s669_s7 = sand.u32 (!%p155_p3), 1, %s562_s10  }
  0x1c   : > { %158 = sbr.rel (%p155_p3) target bundleno = 69 (0x45), region = 24  ;;  %s364_s8 = sshll.u32 (!%p155_p3), %s669_s7, 3 }
  0x1d   : > { %s161_s15 = scalar_lea.sflag (!%p155_p3), [#allocation3], %s669_s7  ;;  %s164_s16 = scalar_lea.vmem (!%p155_p3), [#allocation2], %s364_s8 }
  0x21   : > { %545 = dma.done.wait (%p642_p8), %s161_s15, 128  }
  0x22   : > { %547 = vsyncadd (%p642_p8), %s161_s15, 4294967168  ;;  %v189_v0 = vld [vmem:[%s164_s16] sm:$0xff]  ;;  %s248_s20 = scalar_lea.hbm %s734_s2, %s570_s12  ;;  %v196_v7 = vlaneseq  ;;  %s188_s21 = scalar_lea.vmem [#allocation6], %s669_s7 }
  0x23   : > { %vm191_vm0 = vcmp.lt.s32.totalorder %v189_v0, 0  ;;  %v192_v1 = vsub.s32 2147483648, %v189_v0  ;;  %vm194_vm1 = vcmp.ne.f32.partialorder %v189_v0, %v189_v0  ;;  %s250_s25 = sshll.u32 %s188_s21, 4  ;;  %s252_s26 = sshll.u32 %s248_s20, 4  ;;  %s251_s25 = int_to_ptr.vmem [resolvable:$true] %s250_s25  ;;  %s253_s26 = int_to_ptr.hbm [resolvable:$true] %s252_s26 }
  0x24   : > { %v197_v10 = vshrl.u32 %v196_v7, 7  ;;  %s225_s27 = scalar_lea.sflag [#allocation7], %s669_s7  ;;  %s478_s28 = sshra.s32 %s253_s26, 4  ;;  %s479_s28 = int_to_ptr.hbm [resolvable:$true] %s478_s28 }
  0x25   : > { %v193_v2 = vsel %vm191_vm0, %v192_v1, %v189_v0  ;;  %s480_s29 = scalar_lea.hbm %s479_s28, 1  ;;  %s484_s4 = scalar_lea.hbm %s734_s2, 2 }
  0x26   : > { %v195_v3 = vsel %vm194_vm1, 2147483648, %v193_v2  ;;  %p481_p4 = scmp.ne.s32.totalorder %s479_s28, %s480_s29  ;;  %p485_p7 = scmp.lt.s32.totalorder %s479_s28, %s734_s2 }
  0x27   : > { %v198_v4 = vrot.slane %v195_v3, 4  ;;  %p486_p8 = scmp.lt.s32.totalorder %s484_s4, %s480_s29 }
  0x28   : > { %p482_p5 = pnand %p481_p4, %p646_p9 }
  0x29   : > { %vm199_vm2 = vcmp.lt.s32.totalorder %v195_v3, %v198_v4  ;;  %p487_p10 = por %p486_p8, %p485_p7 }
  0x2a   : > { %v200_v5 = vsel %vm199_vm2, %v195_v3, %v198_v4  ;;  %p483_p6 = pneg %p482_p5 }
  0x2b   : > { %v201_v6 = vrot.slane %v200_v5, 2 }
  0x2c   : > { %p488_p13 = pnand %p487_p10, %p483_p6 }
  0x2d   : > { %vm202_vm3 = vcmp.lt.s32.totalorder %v200_v5, %v201_v6 }
  0x2e   : > { %v203_v8 = vsel %vm202_vm3, %v200_v5, %v201_v6 }
  0x2f   : > { %v204_v9 = vrot.slane %v203_v8, 1 }
  0x31   : > { %vm205_vm4 = vcmp.lt.s32.totalorder %v203_v8, %v204_v9 }
  0x32   : > { %v206_v11 = vsel %vm205_vm4, %v203_v8, %v204_v9 }
  0x33   : > { %vm207_vm5 = vcmp.eq.s32.totalorder %v195_v3, %v206_v11  ;;  %219 = vst [vmem:[%s188_s21] sm:$0x1] %v206_v11 }
  0x34   : > { %v208_v12 = vsel %vm207_vm5, %v197_v10, 8 }
  0x35   : > { %491 = shalt.err (!%p488_p13)
}
  0x36   : > { %370 = dma.vmem_to_hbm [thread:$0]  (%p646_p9), %s251_s25, 16, %s253_s26, %s225_s27   ;;  %v209_v13 = vrot.slane %v208_v12, 4 }
  0x37   : > { %s234_s16 = scalar_lea.hbm %s733_s1, %s570_s12  ;;  %s182_s18 = scalar_lea.vmem [#allocation5], %s669_s7 }
  0x38   : > { %vm210_vm6 = vcmp.lt.s32.totalorder %v208_v12, %v209_v13  ;;  %s236_s19 = sshll.u32 %s182_s18, 4  ;;  %s238_s20 = sshll.u32 %s234_s16, 4  ;;  %s237_s19 = int_to_ptr.vmem [resolvable:$true] %s236_s19  ;;  %s239_s20 = int_to_ptr.hbm [resolvable:$true] %s238_s20 }
  0x39   : > { %v211_v14 = vsel %vm210_vm6, %v208_v12, %v209_v13  ;;  %s221_s21 = scalar_lea.sflag [#allocation4], %s669_s7  ;;  %s506_s25 = sshra.s32 %s239_s20, 4  ;;  %s507_s25 = int_to_ptr.hbm [resolvable:$true] %s506_s25 }
  0x3a   : > { %v212_v15 = vrot.slane %v211_v14, 2  ;;  %s508_s26 = scalar_lea.hbm %s507_s25, 1  ;;  %s512_s28 = scalar_lea.hbm %s733_s1, 2 }
  0x3b   : > { %p509_p0 = scmp.ne.s32.totalorder %s507_s25, %s508_s26  ;;  %p513_p3 = scmp.lt.s32.totalorder %s507_s25, %s733_s1 }
  0x3c   : > { %vm213_vm7 = vcmp.lt.s32.totalorder %v211_v14, %v212_v15  ;;  %p514_p4 = scmp.lt.s32.totalorder %s512_s28, %s508_s26 }
  0x3d   : > { %v214_v16 = vsel %vm213_vm7, %v211_v14, %v212_v15  ;;  %p510_p1 = pnand %p509_p0, %p646_p9 }
  0x3e   : > { %v215_v17 = vrot.slane %v214_v16, 1  ;;  %p515_p5 = por %p514_p4, %p513_p3 }
  0x3f   : > { %p511_p2 = pneg %p510_p1 }
  0x40   : > { %vm216_vm8 = vcmp.lt.s32.totalorder %v214_v16, %v215_v17 }
  0x41   : > { %v217_v18 = vsel %vm216_vm8, %v214_v16, %v215_v17  ;;  %p516_p6 = pnand %p515_p5, %p511_p2 }
  0x42   : > { %218 = vst [vmem:[%s182_s18] sm:$0x1] %v217_v18 }
  0x43   : > { %519 = shalt.err (!%p516_p6)
}
  0x44   : > { %369 = dma.vmem_to_hbm [thread:$0]  (%p646_p9), %s237_s19, 16, %s239_s20, %s221_s21  }
  0x45 PF: > { %s264_s7 = sand.u32 1, %s558_s9   ;;  %p378_p7 = pnand %p360_p12, %p653_p11 }
  0x46   : > { %s265_s3 = scalar_lea.sflag [#allocation4], %s264_s7 }
  0x47   : > { %p379_p8 = pneg %p378_p7 }
  0x49   : > { %549 = dma.done.wait (%p379_p8), %s265_s3, 16  }
  0x4a   : > { %551 = vsyncadd (%p379_p8), %s265_s3, 4294967280  ;;  %s274_s4 = scalar_lea.sflag [#allocation7], %s264_s7 }
  0x4b   : > { %553 = dma.done.wait (%p379_p8), %s274_s4, 16  }
  0x4c   : > { %555 = vsyncadd (%p379_p8), %s274_s4, 4294967280  ;;  %s22_s14 = sadd.s32 1, %s578_s14   ;;  %s739_s9 = smov %s562_s10 }
  0x4d   : > { %p19_p10 = scmp.ge.s32.totalorder %s22_s14, 4   ;;  %s740_s10 = smov %s566_s11 }
  0x4e   : > { %s741_s11 = smov %s651_s23  ;;  %s742_s12 = smov %s574_s13 }
  0x4f   : > { %s743_s13 = smov %s745_s17  ;;  %21 = sbr.rel (!%p19_p10) target bundleno = 8 (0x8), region = 86 }
  0x54   :  { %279 = vsyncpa [#allocation3], 1 }
  0x55   :  { %281 = vsyncpa [#allocation3 + $0x1], 1 }
  0x56   :  { %282 = vsyncpa [#allocation4], 1 }
  0x57   :  { %284 = vsyncpa [#allocation4 + $0x1], 1 }
  0x58   :  { %285 = vsyncpa [#allocation7], 1 }
  0x59   :  { %287 = vsyncpa [#allocation7 + $0x1], 1 }

</bundles_post_ra>
